<compile_context>
chip_gen: v7x
topology: tpu7x:2x2x1
jax: 0.10.0
libtpu: 0.0.40
codegen_flags: <defaults>
</compile_context>

<pallas_src>
import jax
import jax.numpy as jnp
from jax.experimental import pallas as pl
from jax.experimental.pallas import tpu as pltpu

KSIZES = (3, 4, 5)   # conv kernel heights, as in the module
LANE = 128


def _round_up(x, m):
    return (x + m - 1) // m * m


def _pick_block_b(B, S, target_m=512):
    """Largest batch block with M = bt*S near target that divides B and keeps the
    output tile legal ((bt % 8 == 0) or bt == B)."""
    cap = max(1, target_m // max(S, 1))
    for bt in range(min(B, cap), 0, -1):
        if B % bt == 0 and (bt == B or bt % 8 == 0):
            return bt
    return B


def net_kernel(x_ref, wall_ref, cbias_ref,
               fc1w_ref, fc1b_ref, fc2w_ref, fc2b_ref,
               g1_ref, g2_ref, headw_ref, headb_ref,
               y_ref):
    """Fused post-BERT forward for one batch block.

    x_ref     : [Bt, S, H]        bf16   BERT sequence_output block
    wall_ref  : [H, 12*Cp]        bf16   fused conv taps (k=3|4|5, channel-padded)
    cbias_ref : [3, Cp]           f32    conv biases (one row per kernel size)
    fc1w_ref  : [3*Cp, Np]        bf16   fc1b_ref: [1, Np] f32
    fc2w_ref  : [Np, Np]          bf16   fc2b_ref: [1, Np] f32
    g1/g2_ref : [1, Np]           f32    HAT gates sigmoid(s*efc(t)) (precomputed)
    headw_ref : [Np, Op]          bf16   all task heads fused, lane-padded
    headb_ref : [1, Op]           f32
    y_ref     : [Bt, Op]          f32    lane-dense logits block (sliced in wrapper)
    """
    Bt, S, H = x_ref.shape
    Cp = cbias_ref.shape[-1]

    x = x_ref[...]                                               # bf16 [Bt, S, H]

    # One fused MXU pass over all taps of all three convs.
    u = jnp.dot(x.reshape(Bt * S, H), wall_ref[...],
                preferred_element_type=jnp.float32)              # [Bt*S, 12*Cp] f32
    u = u.reshape(Bt, S, -1)                                     # [Bt, S, 12*Cp]

    cb = cbias_ref[...]                                          # [3, Cp]

    # Per-conv shifted tap accumulation + max-pool over the valid window,
    # then bias + ReLU (commute with the max: bias const over Sp, ReLU monotone).
    pooled = []
    base = 0
    for ci, k in enumerate(KSIZES):
        Sp = S - k + 1
        acc = u[:, 0:Sp, base * Cp:(base + 1) * Cp]
        for dk in range(1, k):
            acc = acc + u[:, dk:dk + Sp, (base + dk) * Cp:(base + dk + 1) * Cp]
        m = jnp.max(acc, axis=1)                                 # [Bt, Cp]
        pooled.append(jnp.maximum(m + cb[ci:ci + 1, :], 0.0))
        base += k

    p = jnp.concatenate(pooled, axis=-1)                         # [Bt, 3*Cp] f32

    # fc1 -> ReLU -> HAT gate   (drop2 = identity at inference)
    h = jnp.dot(p.astype(jnp.bfloat16), fc1w_ref[...],
                preferred_element_type=jnp.float32) + fc1b_ref[...]
    h = jnp.maximum(h, 0.0) * g1_ref[...]

    # fc2 -> ReLU -> HAT gate
    h = jnp.dot(h.astype(jnp.bfloat16), fc2w_ref[...],
                preferred_element_type=jnp.float32) + fc2b_ref[...]
    h = jnp.maximum(h, 0.0) * g2_ref[...]

    # All per-task heads in one matmul, one lane-dense store.
    y_ref[...] = (jnp.dot(h.astype(jnp.bfloat16), headw_ref[...],
                          preferred_element_type=jnp.float32)
                  + headb_ref[...])


def net_forward(seq_out, params, t, s=1.0):
    """Pad/fuse parameters, select HAT rows for task t, call the Pallas kernel."""
    B, S, H = seq_out.shape
    assert S >= max(KSIZES), "seq_len must be >= the largest conv kernel size"

    C = params["b3"].shape[-1]
    nhid = params["fc1_b"].shape[-1]
    T, head_in, n = params["head_w"].shape
    assert head_in == nhid, "head input width must equal fc2 output width"

    Cp = _round_up(C, LANE)
    Np = _round_up(nhid, LANE)
    Op = _round_up(T * n, LANE)
    Ktot = sum(KSIZES)

    f32, bf16 = jnp.float32, jnp.bfloat16

    # --- fused conv weight slab [H, 12*Cp]: taps of k=3, then k=4, then k=5 ---
    taps = []
    for k, wname in zip(KSIZES, ("w3", "w4", "w5")):
        w = jnp.pad(params[wname], ((0, 0), (0, 0), (0, Cp - C)))  # [k, H, Cp]
        taps.append(jnp.transpose(w, (1, 0, 2)).reshape(H, k * Cp))
    w_all = jnp.concatenate(taps, axis=1).astype(bf16)             # [H, 12*Cp]

    cbias = jnp.stack([jnp.pad(params[b].reshape(-1), (0, Cp - C))
                       for b in ("b3", "b4", "b5")], axis=0).astype(f32)  # [3, Cp]

    # --- fc1: pad each C-row block to Cp, columns to Np ---
    fc1w_raw = params["fc1_w"]                                     # [3*C, nhid]
    fc1w = jnp.concatenate(
        [jnp.pad(fc1w_raw[i * C:(i + 1) * C, :], ((0, Cp - C), (0, Np - nhid)))
         for i in range(3)], axis=0).astype(bf16)                  # [3*Cp, Np]
    fc1b = jnp.pad(params["fc1_b"].reshape(1, -1),
                   ((0, 0), (0, Np - nhid))).astype(f32)

    fc2w = jnp.pad(params["fc2_w"],
                   ((0, Np - nhid), (0, Np - nhid))).astype(bf16)  # [Np, Np]
    fc2b = jnp.pad(params["fc2_b"].reshape(1, -1),
                   ((0, 0), (0, Np - nhid))).astype(f32)

    # --- HAT gates: independent of x, computed in plain JAX ---
    g1 = jax.nn.sigmoid(s * params["efc1"][t])[None, :]            # [1, nhid]
    g2 = jax.nn.sigmoid(s * params["efc2"][t])[None, :]
    g1p = jnp.pad(g1, ((0, 0), (0, Np - nhid))).astype(f32)
    g2p = jnp.pad(g2, ((0, 0), (0, Np - nhid))).astype(f32)

    # --- all task heads fused into one [Np, Op] slab ---
    hw = jnp.transpose(params["head_w"], (1, 0, 2)).reshape(nhid, T * n)
    headw = jnp.pad(hw, ((0, Np - nhid), (0, Op - T * n))).astype(bf16)
    headb = jnp.pad(params["head_b"].reshape(1, T * n),
                    ((0, 0), (0, Op - T * n))).astype(f32)

    x = seq_out.astype(bf16)

    bt = _pick_block_b(B, S)
    grid = (B // bt,)

    def whole(arr):
        nd = arr.ndim
        return pl.BlockSpec(arr.shape, lambda i: (0,) * nd)

    flops = 2 * B * S * H * (Ktot * Cp) + 2 * B * (3 * Cp) * Np \
        + 2 * B * Np * Np + 2 * B * Np * Op
    bytes_accessed = (x.size * 2 + w_all.size * 2 + fc1w.size * 2
                      + fc2w.size * 2 + headw.size * 2
                      + cbias.size * 4 + 4 * Np * 4 + Op * 4 + B * Op * 4)

    y_pad = pl.pallas_call(
        net_kernel,
        out_shape=jax.ShapeDtypeStruct((B, Op), jnp.float32),
        grid=grid,
        in_specs=[pl.BlockSpec((bt, S, H), lambda i: (i, 0, 0)),   # x (batch-gridded)
                  whole(w_all), whole(cbias),
                  whole(fc1w), whole(fc1b),
                  whole(fc2w), whole(fc2b),
                  whole(g1p), whole(g2p),
                  whole(headw), whole(headb)],
        out_specs=pl.BlockSpec((bt, Op), lambda i: (i, 0)),
        compiler_params=pltpu.CompilerParams(
            dimension_semantics=("parallel",),
            vmem_limit_bytes=32 * 1024 * 1024),   # safe on v5e/v6e/v7x (64 MiB phys on v7x)
        cost_estimate=pl.CostEstimate(flops=int(flops), transcendentals=0,
                                      bytes_accessed=int(bytes_accessed)),
    )(x, w_all, cbias, fc1w, fc1b, fc2w, fc2b, g1p, g2p, headw, headb)

    y = y_pad[:, :T * n].reshape(B, T, n).transpose(1, 0, 2)       # [T, B, n]
    return y, g1, g2


def init_params(key, *, H, nhid, C, taskcla):
    T = len(taskcla)
    n = taskcla[0][1]
    ks = jax.random.split(key, 12)

    def rnd(k, shape, scale=0.05):
        return scale * jax.random.normal(k, shape, jnp.float32)

    return {
        # Conv2d(1, 100, (k, H)) weights, stored as [k, H, C] (W_torch[c,0,dk,h] == W[dk,h,c])
        "w3": rnd(ks[0], (3, H, C)), "b3": rnd(ks[1], (1, C)),
        "w4": rnd(ks[2], (4, H, C)), "b4": rnd(ks[3], (1, C)),
        "w5": rnd(ks[4], (5, H, C)), "b5": rnd(ks[5], (1, C)),
        # fc1: Linear(3*C, nhid); fc2: Linear(nhid, nhid)   (stored [in, out])
        "fc1_w": rnd(ks[6], (3 * C, nhid)), "fc1_b": rnd(ks[7], (1, nhid)),
        "fc2_w": rnd(ks[8], (nhid, nhid)),  "fc2_b": rnd(ks[9], (1, nhid)),
        # HAT gate embeddings efc1 / efc2: Embedding(T, nhid)
        "efc1": rnd(ks[10], (T, nhid), scale=1.0),
        "efc2": rnd(ks[11], (T, nhid), scale=1.0),
        # per-task heads: Linear(bert_hidden_size == nhid, n)
        "head_w": rnd(jax.random.fold_in(key, 100), (T, nhid, n)),
        "head_b": rnd(jax.random.fold_in(key, 101), (T, 1, n)),
    }


if __name__ == "__main__":
    B, S, H = 2, 8, 32          # batch, seq_len, bert_hidden_size (= nhid)
    C = 100                     # conv out-channels per kernel size, as in the module
    taskcla = [(0, 3), (1, 3)]  # two tasks, 3 classes each
    nhid = H

    key = jax.random.PRNGKey(0)
    k_x, k_p = jax.random.split(key)
    # Synthetic stand-in for the frozen BERT sequence_output.
    seq_out = jax.random.normal(k_x, (B, S, H), jnp.float32)
    params = init_params(k_p, H=H, nhid=nhid, C=C, taskcla=taskcla)

    t = 1                       # active task index
    y, gfc1, gfc2 = net_forward(seq_out, params, t, s=1.0)
    jax.block_until_ready((y, gfc1, gfc2))

    assert y.shape == (len(taskcla), B, taskcla[0][1])
    assert gfc1.shape == (1, nhid) and gfc2.shape == (1, nhid)
    assert bool(jnp.all(jnp.isfinite(y)))
    print("KERNEL_OK")
</pallas_src>

<mosaic_0001>
module attributes {stable_mosaic.version = 11 : i64} {
  func.func @net_kernel(%arg0: i32, %arg1: memref<2x8x32xbf16, #tpu.memory_space<vmem>>, %arg2: memref<32x1536xbf16, #tpu.memory_space<vmem>>, %arg3: memref<3x128xf32, #tpu.memory_space<vmem>>, %arg4: memref<384x128xbf16, #tpu.memory_space<vmem>>, %arg5: memref<1x128xf32, #tpu.memory_space<vmem>>, %arg6: memref<128x128xbf16, #tpu.memory_space<vmem>>, %arg7: memref<1x128xf32, #tpu.memory_space<vmem>>, %arg8: memref<1x128xf32, #tpu.memory_space<vmem>>, %arg9: memref<1x128xf32, #tpu.memory_space<vmem>>, %arg10: memref<128x128xbf16, #tpu.memory_space<vmem>>, %arg11: memref<1x128xf32, #tpu.memory_space<vmem>>, %arg12: memref<2x128xf32, #tpu.memory_space<vmem>>) attributes {dimension_semantics = [#tpu.dimension_semantics<parallel>], iteration_bounds = array<i64: 1>, scalar_prefetch = 0 : i64, scratch_operands = 0 : i64, tpu.core_type = #tpu.core_type<tc>, window_params = [{transform_indices = @transform_0, window_bounds = array<i64: 2, 8, 32>}, {pipeline_mode = #tpu.pipeline_mode<synchronous>, transform_indices = @transform_1, window_bounds = array<i64: 32, 1536>}, {pipeline_mode = #tpu.pipeline_mode<synchronous>, transform_indices = @transform_2, window_bounds = array<i64: 3, 128>}, {pipeline_mode = #tpu.pipeline_mode<synchronous>, transform_indices = @transform_3, window_bounds = array<i64: 384, 128>}, {pipeline_mode = #tpu.pipeline_mode<synchronous>, transform_indices = @transform_4, window_bounds = array<i64: 1, 128>}, {pipeline_mode = #tpu.pipeline_mode<synchronous>, transform_indices = @transform_5, window_bounds = array<i64: 128, 128>}, {pipeline_mode = #tpu.pipeline_mode<synchronous>, transform_indices = @transform_6, window_bounds = array<i64: 1, 128>}, {pipeline_mode = #tpu.pipeline_mode<synchronous>, transform_indices = @transform_7, window_bounds = array<i64: 1, 128>}, {pipeline_mode = #tpu.pipeline_mode<synchronous>, transform_indices = @transform_8, window_bounds = array<i64: 1, 128>}, {pipeline_mode = #tpu.pipeline_mode<synchronous>, transform_indices = @transform_9, window_bounds = array<i64: 128, 128>}, {pipeline_mode = #tpu.pipeline_mode<synchronous>, transform_indices = @transform_10, window_bounds = array<i64: 1, 128>}, {transform_indices = @transform_11, window_bounds = array<i64: 2, 128>}]} {
    %c0 = arith.constant 0 : index
    %c0_0 = arith.constant 0 : index
    %c0_1 = arith.constant 0 : index
    %0 = vector.load %arg1[%c0, %c0_0, %c0_1] : memref<2x8x32xbf16, #tpu.memory_space<vmem>>, vector<2x8x32xbf16>
    %1 = vector.shape_cast %0 : vector<2x8x32xbf16> to vector<16x32xbf16>
    %c0_2 = arith.constant 0 : index
    %c0_3 = arith.constant 0 : index
    %2 = vector.load %arg2[%c0_2, %c0_3] : memref<32x1536xbf16, #tpu.memory_space<vmem>>, vector<32x1536xbf16>
    %cst = arith.constant dense<0.000000e+00> : vector<16x1536xf32>
    %3 = tpu.matmul %1, %2, %cst {dimension_numbers = #tpu.dot_dimension_numbers<[1], [0], [0], [1], [0, 0, 1, 1], [], []>} : vector<16x32xbf16>, vector<32x1536xbf16>, vector<16x1536xf32> -> vector<16x1536xf32>
    %4 = vector.shape_cast %3 : vector<16x1536xf32> to vector<2x8x1536xf32>
    %c0_4 = arith.constant 0 : index
    %c0_5 = arith.constant 0 : index
    %5 = vector.load %arg3[%c0_4, %c0_5] : memref<3x128xf32, #tpu.memory_space<vmem>>, vector<3x128xf32>
    %6 = vector.extract_strided_slice %4 {offsets = [0, 0, 0], sizes = [2, 6, 128], strides = [1, 1, 1]} : vector<2x8x1536xf32> to vector<2x6x128xf32>
    %7 = vector.extract_strided_slice %4 {offsets = [0, 1, 128], sizes = [2, 6, 128], strides = [1, 1, 1]} : vector<2x8x1536xf32> to vector<2x6x128xf32>
    %8 = arith.addf %6, %7 : vector<2x6x128xf32>
    %9 = vector.extract_strided_slice %4 {offsets = [0, 2, 256], sizes = [2, 6, 128], strides = [1, 1, 1]} : vector<2x8x1536xf32> to vector<2x6x128xf32>
    %10 = arith.addf %8, %9 : vector<2x6x128xf32>
    %cst_6 = arith.constant dense<0xFF800000> : vector<2x128xf32>
    %11 = vector.multi_reduction <maximumf>, %10, %cst_6 [1] : vector<2x6x128xf32> to vector<2x128xf32>
    %12 = vector.extract_strided_slice %5 {offsets = [0, 0], sizes = [1, 128], strides = [1, 1]} : vector<3x128xf32> to vector<1x128xf32>
    %13 = vector.broadcast %12 : vector<1x128xf32> to vector<2x128xf32>
    %14 = arith.addf %11, %13 : vector<2x128xf32>
    %cst_7 = arith.constant 0.000000e+00 : f32
    %15 = vector.broadcast %cst_7 : f32 to vector<2x128xf32>
    %16 = arith.maximumf %14, %15 : vector<2x128xf32>
    %17 = vector.extract_strided_slice %4 {offsets = [0, 0, 384], sizes = [2, 5, 128], strides = [1, 1, 1]} : vector<2x8x1536xf32> to vector<2x5x128xf32>
    %18 = vector.extract_strided_slice %4 {offsets = [0, 1, 512], sizes = [2, 5, 128], strides = [1, 1, 1]} : vector<2x8x1536xf32> to vector<2x5x128xf32>
    %19 = arith.addf %17, %18 : vector<2x5x128xf32>
    %20 = vector.extract_strided_slice %4 {offsets = [0, 2, 640], sizes = [2, 5, 128], strides = [1, 1, 1]} : vector<2x8x1536xf32> to vector<2x5x128xf32>
    %21 = arith.addf %19, %20 : vector<2x5x128xf32>
    %22 = vector.extract_strided_slice %4 {offsets = [0, 3, 768], sizes = [2, 5, 128], strides = [1, 1, 1]} : vector<2x8x1536xf32> to vector<2x5x128xf32>
    %23 = arith.addf %21, %22 : vector<2x5x128xf32>
    %cst_8 = arith.constant dense<0xFF800000> : vector<2x128xf32>
    %24 = vector.multi_reduction <maximumf>, %23, %cst_8 [1] : vector<2x5x128xf32> to vector<2x128xf32>
    %25 = vector.extract_strided_slice %5 {offsets = [1, 0], sizes = [1, 128], strides = [1, 1]} : vector<3x128xf32> to vector<1x128xf32>
    %26 = vector.broadcast %25 : vector<1x128xf32> to vector<2x128xf32>
    %27 = arith.addf %24, %26 : vector<2x128xf32>
    %cst_9 = arith.constant 0.000000e+00 : f32
    %28 = vector.broadcast %cst_9 : f32 to vector<2x128xf32>
    %29 = arith.maximumf %27, %28 : vector<2x128xf32>
    %30 = vector.extract_strided_slice %4 {offsets = [0, 0, 896], sizes = [2, 4, 128], strides = [1, 1, 1]} : vector<2x8x1536xf32> to vector<2x4x128xf32>
    %31 = vector.extract_strided_slice %4 {offsets = [0, 1, 1024], sizes = [2, 4, 128], strides = [1, 1, 1]} : vector<2x8x1536xf32> to vector<2x4x128xf32>
    %32 = arith.addf %30, %31 : vector<2x4x128xf32>
    %33 = vector.extract_strided_slice %4 {offsets = [0, 2, 1152], sizes = [2, 4, 128], strides = [1, 1, 1]} : vector<2x8x1536xf32> to vector<2x4x128xf32>
    %34 = arith.addf %32, %33 : vector<2x4x128xf32>
    %35 = vector.extract_strided_slice %4 {offsets = [0, 3, 1280], sizes = [2, 4, 128], strides = [1, 1, 1]} : vector<2x8x1536xf32> to vector<2x4x128xf32>
    %36 = arith.addf %34, %35 : vector<2x4x128xf32>
    %37 = vector.extract_strided_slice %4 {offsets = [0, 4, 1408], sizes = [2, 4, 128], strides = [1, 1, 1]} : vector<2x8x1536xf32> to vector<2x4x128xf32>
    %38 = arith.addf %36, %37 : vector<2x4x128xf32>
    %cst_10 = arith.constant dense<0xFF800000> : vector<2x128xf32>
    %39 = vector.multi_reduction <maximumf>, %38, %cst_10 [1] : vector<2x4x128xf32> to vector<2x128xf32>
    %40 = vector.extract_strided_slice %5 {offsets = [2, 0], sizes = [1, 128], strides = [1, 1]} : vector<3x128xf32> to vector<1x128xf32>
    %41 = vector.broadcast %40 : vector<1x128xf32> to vector<2x128xf32>
    %42 = arith.addf %39, %41 : vector<2x128xf32>
    %cst_11 = arith.constant 0.000000e+00 : f32
    %43 = vector.broadcast %cst_11 : f32 to vector<2x128xf32>
    %44 = arith.maximumf %42, %43 : vector<2x128xf32>
    %45 = tpu.concatenate %16, %29, %44 in 1 : vector<2x128xf32>, vector<2x128xf32>, vector<2x128xf32> -> vector<2x384xf32>
    %46 = arith.truncf %45 : vector<2x384xf32> to vector<2x384xbf16>
    %c0_12 = arith.constant 0 : index
    %c0_13 = arith.constant 0 : index
    %47 = vector.load %arg4[%c0_12, %c0_13] : memref<384x128xbf16, #tpu.memory_space<vmem>>, vector<384x128xbf16>
    %cst_14 = arith.constant dense<0.000000e+00> : vector<2x128xf32>
    %48 = tpu.matmul %46, %47, %cst_14 {dimension_numbers = #tpu.dot_dimension_numbers<[1], [0], [0], [1], [0, 0, 1, 1], [], []>} : vector<2x384xbf16>, vector<384x128xbf16>, vector<2x128xf32> -> vector<2x128xf32>
    %c0_15 = arith.constant 0 : index
    %c0_16 = arith.constant 0 : index
    %49 = vector.load %arg5[%c0_15, %c0_16] : memref<1x128xf32, #tpu.memory_space<vmem>>, vector<1x128xf32>
    %50 = vector.broadcast %49 : vector<1x128xf32> to vector<2x128xf32>
    %51 = arith.addf %48, %50 : vector<2x128xf32>
    %cst_17 = arith.constant 0.000000e+00 : f32
    %52 = vector.broadcast %cst_17 : f32 to vector<2x128xf32>
    %53 = arith.maximumf %51, %52 : vector<2x128xf32>
    %c0_18 = arith.constant 0 : index
    %c0_19 = arith.constant 0 : index
    %54 = vector.load %arg8[%c0_18, %c0_19] : memref<1x128xf32, #tpu.memory_space<vmem>>, vector<1x128xf32>
    %55 = vector.broadcast %54 : vector<1x128xf32> to vector<2x128xf32>
    %56 = arith.mulf %53, %55 : vector<2x128xf32>
    %57 = arith.truncf %56 : vector<2x128xf32> to vector<2x128xbf16>
    %c0_20 = arith.constant 0 : index
    %c0_21 = arith.constant 0 : index
    %58 = vector.load %arg6[%c0_20, %c0_21] : memref<128x128xbf16, #tpu.memory_space<vmem>>, vector<128x128xbf16>
    %cst_22 = arith.constant dense<0.000000e+00> : vector<2x128xf32>
    %59 = tpu.matmul %57, %58, %cst_22 {dimension_numbers = #tpu.dot_dimension_numbers<[1], [0], [0], [1], [0, 0, 1, 1], [], []>} : vector<2x128xbf16>, vector<128x128xbf16>, vector<2x128xf32> -> vector<2x128xf32>
    %c0_23 = arith.constant 0 : index
    %c0_24 = arith.constant 0 : index
    %60 = vector.load %arg7[%c0_23, %c0_24] : memref<1x128xf32, #tpu.memory_space<vmem>>, vector<1x128xf32>
    %61 = vector.broadcast %60 : vector<1x128xf32> to vector<2x128xf32>
    %62 = arith.addf %59, %61 : vector<2x128xf32>
    %cst_25 = arith.constant 0.000000e+00 : f32
    %63 = vector.broadcast %cst_25 : f32 to vector<2x128xf32>
    %64 = arith.maximumf %62, %63 : vector<2x128xf32>
    %c0_26 = arith.constant 0 : index
    %c0_27 = arith.constant 0 : index
    %65 = vector.load %arg9[%c0_26, %c0_27] : memref<1x128xf32, #tpu.memory_space<vmem>>, vector<1x128xf32>
    %66 = vector.broadcast %65 : vector<1x128xf32> to vector<2x128xf32>
    %67 = arith.mulf %64, %66 : vector<2x128xf32>
    %68 = arith.truncf %67 : vector<2x128xf32> to vector<2x128xbf16>
    %c0_28 = arith.constant 0 : index
    %c0_29 = arith.constant 0 : index
    %69 = vector.load %arg10[%c0_28, %c0_29] : memref<128x128xbf16, #tpu.memory_space<vmem>>, vector<128x128xbf16>
    %cst_30 = arith.constant dense<0.000000e+00> : vector<2x128xf32>
    %70 = tpu.matmul %68, %69, %cst_30 {dimension_numbers = #tpu.dot_dimension_numbers<[1], [0], [0], [1], [0, 0, 1, 1], [], []>} : vector<2x128xbf16>, vector<128x128xbf16>, vector<2x128xf32> -> vector<2x128xf32>
    %c0_31 = arith.constant 0 : index
    %c0_32 = arith.constant 0 : index
    %71 = vector.load %arg11[%c0_31, %c0_32] : memref<1x128xf32, #tpu.memory_space<vmem>>, vector<1x128xf32>
    %72 = vector.broadcast %71 : vector<1x128xf32> to vector<2x128xf32>
    %73 = arith.addf %70, %72 : vector<2x128xf32>
    %c0_33 = arith.constant 0 : index
    %c0_34 = arith.constant 0 : index
    %74 = vector.load %arg12[%c0_33, %c0_34] : memref<2x128xf32, #tpu.memory_space<vmem>>, vector<2x128xf32>
    tpu.vector_store %arg12[%c0_33, %c0_34], %73 {strides = array<i32>} : memref<2x128xf32, #tpu.memory_space<vmem>>, vector<2x128xf32>,
    return
  }
  func.func @transform_0(%arg0: i32) -> (i32, i32, i32) {
    %c0_i32 = arith.constant 0 : i32
    %c0_i32_0 = arith.constant 0 : i32
    %c0_i32_1 = arith.constant 0 : i32
    return %arg0, %c0_i32, %c0_i32_0 : i32, i32, i32
  }
  func.func @transform_1(%arg0: i32) -> (i32, i32) {
    %c0_i32 = arith.constant 0 : i32
    %c0_i32_0 = arith.constant 0 : i32
    %c0_i32_1 = arith.constant 0 : i32
    return %c0_i32, %c0_i32_0 : i32, i32
  }
  func.func @transform_2(%arg0: i32) -> (i32, i32) {
    %c0_i32 = arith.constant 0 : i32
    %c0_i32_0 = arith.constant 0 : i32
    %c0_i32_1 = arith.constant 0 : i32
    return %c0_i32, %c0_i32_0 : i32, i32
  }
  func.func @transform_3(%arg0: i32) -> (i32, i32) {
    %c0_i32 = arith.constant 0 : i32
    %c0_i32_0 = arith.constant 0 : i32
    %c0_i32_1 = arith.constant 0 : i32
    return %c0_i32, %c0_i32_0 : i32, i32
  }
  func.func @transform_4(%arg0: i32) -> (i32, i32) {
    %c0_i32 = arith.constant 0 : i32
    %c0_i32_0 = arith.constant 0 : i32
    %c0_i32_1 = arith.constant 0 : i32
    return %c0_i32, %c0_i32_0 : i32, i32
  }
  func.func @transform_5(%arg0: i32) -> (i32, i32) {
    %c0_i32 = arith.constant 0 : i32
    %c0_i32_0 = arith.constant 0 : i32
    %c0_i32_1 = arith.constant 0 : i32
    return %c0_i32, %c0_i32_0 : i32, i32
  }
  func.func @transform_6(%arg0: i32) -> (i32, i32) {
    %c0_i32 = arith.constant 0 : i32
    %c0_i32_0 = arith.constant 0 : i32
    %c0_i32_1 = arith.constant 0 : i32
    return %c0_i32, %c0_i32_0 : i32, i32
  }
  func.func @transform_7(%arg0: i32) -> (i32, i32) {
    %c0_i32 = arith.constant 0 : i32
    %c0_i32_0 = arith.constant 0 : i32
    %c0_i32_1 = arith.constant 0 : i32
    return %c0_i32, %c0_i32_0 : i32, i32
  }
  func.func @transform_8(%arg0: i32) -> (i32, i32) {
    %c0_i32 = arith.constant 0 : i32
    %c0_i32_0 = arith.constant 0 : i32
    %c0_i32_1 = arith.constant 0 : i32
    return %c0_i32, %c0_i32_0 : i32, i32
  }
  func.func @transform_9(%arg0: i32) -> (i32, i32) {
    %c0_i32 = arith.constant 0 : i32
    %c0_i32_0 = arith.constant 0 : i32
    %c0_i32_1 = arith.constant 0 : i32
    return %c0_i32, %c0_i32_0 : i32, i32
  }
  func.func @transform_10(%arg0: i32) -> (i32, i32) {
    %c0_i32 = arith.constant 0 : i32
    %c0_i32_0 = arith.constant 0 : i32
    %c0_i32_1 = arith.constant 0 : i32
    return %c0_i32, %c0_i32_0 : i32, i32
  }
  func.func @transform_11(%arg0: i32) -> (i32, i32) {
    %c0_i32 = arith.constant 0 : i32
    %c0_i32_0 = arith.constant 0 : i32
    return %arg0, %c0_i32 : i32, i32
  }
}

</mosaic_0001>

<bundles_post_ra>
// kernel: tpu_custom_call.1
= control target key start
LH: loop header
LB: loop body
LE: loop exit
PB: predicated region body
PF: predicated region fallthrough
CT: control target
= control target key end

     0   :  { %16 = vsyncpa [#allocation3], 0  ;;  %s1862_s0 = inlined_call_operand.hbm [shape: bf16[2,8,32], index: 0, kind: input, shape index: {}]   ;;  %s1863_s1 = inlined_call_operand.hbm [shape: bf16[32,1536], index: 1, kind: input, shape index: {}]   ;;  %s1864_s2 = inlined_call_operand.vmem [shape: f32[3,128], index: 2, kind: input, shape index: {}]   ;;  %s1865_s3 = inlined_call_operand.hbm [shape: bf16[384,128], index: 3, kind: input, shape index: {}]   ;;  %s1866_s4 = inlined_call_operand.vmem [shape: f32[1,128], index: 4, kind: input, shape index: {}]   ;;  %s1867_s5 = inlined_call_operand.hbm [shape: bf16[128,128], index: 5, kind: input, shape index: {}]   ;;  %s1868_s6 = inlined_call_operand.vmem [shape: f32[1,128], index: 6, kind: input, shape index: {}]   ;;  %s1869_s7 = inlined_call_operand.vmem [shape: f32[1,128], index: 7, kind: input, shape index: {}]   ;;  %s1870_s8 = inlined_call_operand.vmem [shape: f32[1,128], index: 8, kind: input, shape index: {}]   ;;  %s1871_s9 = inlined_call_operand.hbm [shape: bf16[128,128], index: 9, kind: input, shape index: {}]   ;;  %s1872_s10 = inlined_call_operand.vmem [shape: f32[1,128], index: 10, kind: input, shape index: {}]   ;;  %s1873_s11 = inlined_call_operand.hbm [shape: f32[2,128], index: 11, kind: output, shape index: {}]  }
   0x1   :  { %17 = vsyncpa [#allocation6], 0 }
   0x2   :  { %18 = vsyncpa [#allocation9], 0 }
   0x3   :  { %19 = vsyncpa [#allocation4], 0  ;;  %s1636_s17 = smov [#allocation5]   ;;  %s1496_s21 = scalar_lea.hbm %s1863_s1, 3072 }
   0x4   :  { %s37_s18 = sshll.u32 %s1636_s17, 4  ;;  %p1497_p0 = scmp.ne.s32.totalorder %s1863_s1, %s1496_s21  ;;  %s38_s18 = int_to_ptr.vmem [resolvable:$true] %s37_s18 }
   0x5   :  { %p1500_p1 = scmp.lt.u32.totalorder %s1496_s21, %s1863_s1 }
   0x7   :  { %p1502_p2 = pnand %p1500_p1, %p1497_p0 }
   0x9   :  { %1505 = shalt.err (!%p1502_p2)
}
   0xa   :  { %s1506_s26 = scalar_lea.vmem %s38_s18, 3072  ;;  %p1511_p4 = scmp.lt.s32.totalorder %s38_s18, %s38_s18 }
   0xb   :  { %p1507_p3 = scmp.ne.s32.totalorder %s38_s18, %s1506_s26  ;;  %p1512_p5 = scmp.lt.s32.totalorder %s1506_s26, %s1506_s26 }
   0xd   :  { %p1513_p6 = por %p1512_p5, %p1511_p4 }
   0xf   :  { %p1514_p7 = pnand %p1513_p6, %p1507_p3 }
  0x11   :  { %1517 = shalt.err (!%p1514_p7)
}
  0x12   :  { %s1637_s27 = smov 768   ;;  %s1638_s28 = smov 48  }
  0x13   :  { %43 = dma.hbm_to_vmem [thread:$0]  %s1863_s1, 3072, %s38_s18, [#allocation6], %s1637_s27, %s1637_s27, %s1638_s28  }
  0x14   :  { %s1639_s12 = smov [#allocation8]   ;;  %s1640_s14 = smov [#allocation2]  }
  0x15   :  { %s65_s13 = sshll.u32 %s1639_s12, 4  ;;  %s25_s15 = sshll.u32 %s1640_s14, 4  ;;  %s66_s13 = int_to_ptr.vmem [resolvable:$true] %s65_s13  ;;  %s26_s15 = int_to_ptr.vmem [resolvable:$true] %s25_s15 }
  0x16   :  { %s1518_s19 = scalar_lea.hbm %s1867_s5, 1024 }
  0x17   :  { %p1519_p8 = scmp.ne.s32.totalorder %s1867_s5, %s1518_s19  ;;  %p1522_p9 = scmp.lt.u32.totalorder %s1518_s19, %s1867_s5 }
  0x19   :  { %p1524_p10 = pnand %p1522_p9, %p1519_p8 }
  0x1b   :  { %1527 = shalt.err (!%p1524_p10)
}
  0x1c   :  { %s1528_s1 = scalar_lea.vmem %s66_s13, 1024  ;;  %p1533_p12 = scmp.lt.s32.totalorder %s66_s13, %s66_s13 }
  0x1d   :  { %p1529_p11 = scmp.ne.s32.totalorder %s66_s13, %s1528_s1  ;;  %p1534_p13 = scmp.lt.s32.totalorder %s1528_s1, %s1528_s1 }
  0x1f   :  { %p1535_p0 = por %p1534_p13, %p1533_p12 }
  0x21   :  { %p1536_p1 = pnand %p1535_p0, %p1529_p11 }
  0x23   :  { %1539 = shalt.err (!%p1536_p1)
}
  0x24   :  { %s1641_s18 = smov 64   ;;  %s1642_s24 = smov 4  }
  0x25   :  { %71 = dma.hbm_to_vmem [thread:$0]  %s1867_s5, 1024, %s66_s13, [#allocation9], %s1641_s18, %s1641_s18, %s1642_s24  }
  0x26   :  { %s1540_s29 = scalar_lea.hbm %s1862_s0, 128 }
  0x27   :  { %p1541_p2 = scmp.ne.s32.totalorder %s1862_s0, %s1540_s29  ;;  %p1544_p3 = scmp.lt.u32.totalorder %s1540_s29, %s1862_s0 }
  0x29   :  { %p1546_p4 = pnand %p1544_p3, %p1541_p2 }
  0x2b   :  { %1549 = shalt.err (!%p1546_p4)
}
  0x2c   :  { %s1550_s17 = scalar_lea.vmem %s26_s15, 128  ;;  %p1555_p6 = scmp.lt.s32.totalorder %s26_s15, %s26_s15 }
  0x2d   :  { %p1551_p5 = scmp.ne.s32.totalorder %s26_s15, %s1550_s17  ;;  %p1556_p7 = scmp.lt.s32.totalorder %s1550_s17, %s1550_s17 }
  0x2f   :  { %p1557_p8 = por %p1556_p7, %p1555_p6 }
  0x31   :  { %p1558_p9 = pnand %p1557_p8, %p1551_p5 }
  0x33   :  { %1561 = shalt.err (!%p1558_p9)
}
  0x34   :  { %31 = dma.hbm_to_vmem [thread:$0]  %s1862_s0, 128, %s26_s15, [#allocation3], %s1641_s18, %s1641_s18, %s1642_s24  }
  0x35   :  { %s1643_s19 = smov [#allocation7]   ;;  %s1644_s21 = smov [#allocation10]  }
  0x36   :  { %s51_s20 = sshll.u32 %s1643_s19, 4  ;;  %s83_s22 = sshll.u32 %s1644_s21, 4  ;;  %s52_s20 = int_to_ptr.vmem [resolvable:$true] %s51_s20  ;;  %s84_s22 = int_to_ptr.vmem [resolvable:$true] %s83_s22 }
  0x37   :  { %s1562_s25 = scalar_lea.hbm %s1865_s3, 3072 }
  0x38   :  { %p1563_p10 = scmp.ne.s32.totalorder %s1865_s3, %s1562_s25  ;;  %p1566_p11 = scmp.lt.u32.totalorder %s1562_s25, %s1865_s3 }
  0x3a   :  { %p1568_p12 = pnand %p1566_p11, %p1563_p10 }
  0x3c   :  { %1571 = shalt.err (!%p1568_p12)
}
  0x3d   :  { %s1572_s0 = scalar_lea.vmem %s52_s20, 3072  ;;  %p1577_p0 = scmp.lt.s32.totalorder %s52_s20, %s52_s20 }
  0x3e   :  { %p1573_p13 = scmp.ne.s32.totalorder %s52_s20, %s1572_s0  ;;  %p1578_p1 = scmp.lt.s32.totalorder %s1572_s0, %s1572_s0 }
  0x40   :  { %p1579_p2 = por %p1578_p1, %p1577_p0 }
  0x42   :  { %p1580_p3 = pnand %p1579_p2, %p1573_p13 }
  0x44   :  { %1583 = shalt.err (!%p1580_p3)
}
  0x45   :  { %57 = dma.hbm_to_vmem [thread:$0]  %s1865_s3, 3072, %s52_s20, [#allocation6], %s1641_s18, %s1641_s18, %s1642_s24  }
  0x46   :  { %s1584_s16 = scalar_lea.hbm %s1871_s9, 1024 }
  0x47   :  { %p1585_p4 = scmp.ne.s32.totalorder %s1871_s9, %s1584_s16  ;;  %p1588_p5 = scmp.lt.u32.totalorder %s1584_s16, %s1871_s9 }
  0x49   :  { %p1590_p6 = pnand %p1588_p5, %p1585_p4 }
  0x4b   :  { %1593 = shalt.err (!%p1590_p6)
}
  0x4c   :  { %s1594_s21 = scalar_lea.vmem %s84_s22, 1024  ;;  %p1599_p8 = scmp.lt.s32.totalorder %s84_s22, %s84_s22 }
  0x4d   :  { %p1595_p7 = scmp.ne.s32.totalorder %s84_s22, %s1594_s21  ;;  %p1600_p9 = scmp.lt.s32.totalorder %s1594_s21, %s1594_s21 }
  0x4f   :  { %p1601_p10 = por %p1600_p9, %p1599_p8 }
  0x51   :  { %p1602_p11 = pnand %p1601_p10, %p1595_p7 }
  0x53   :  { %1605 = shalt.err (!%p1602_p11)
}
  0x54   :  { %89 = dma.hbm_to_vmem [thread:$0]  %s1871_s9, 1024, %s84_s22, [#allocation9], %s1641_s18, %s1641_s18, %s1642_s24  }
  0x55   :  { %1628 = dma.done.wait [#allocation3], 128  }
  0x56   :  { %1629 = vsyncadd [#allocation3], 4294967168 }
  0x57   :  { %1630 = dma.done.wait [#allocation6], 6144  }
  0x58   :  { %1631 = vsyncadd [#allocation6], 4294961152 }
  0x59   :  { %1632 = dma.done.wait [#allocation9], 2048  }
  0x5a   :  { %1633 = vsyncadd [#allocation9], 4294965248  ;;  %v1645_v0 = vmov 0   ;;  %v1419_v1 = vld [vmem:[#allocation5 + $0x4] ss:$48 sps:$4 sm:$0xff]   ;;  %v1431_v9 = vld [vmem:[#allocation2] sm:$0xff]  }
  0x5b   :  { %295 = vmatprep.mubr.bf16.mxu0 %v1645_v0  ;;  %338 = vmatprep.mubr.bf16.mxu1 %v1645_v0  ;;  %v1421_v2 = vld [vmem:[#allocation5] ss:$48 sps:$4 sm:$0xff]   ;;  %v1422_v3 = vld [vmem:[#allocation5 + $0xc] ss:$48 sps:$4 sm:$0xff]   ;;  %v1424_v4 = vld [vmem:[#allocation5 + $0x8] ss:$48 sps:$4 sm:$0xff]  }
  0x5c   :  { %263 = vmatprep.subr.bf16.mxu0 %v1419_v1  ;;  %v1425_v5 = vld [vmem:[#allocation5 + $0x64] ss:$48 sps:$4 sm:$0xff]   ;;  %v1427_v6 = vld [vmem:[#allocation5 + $0x60] ss:$48 sps:$4 sm:$0xff]   ;;  %306 = vmatprep.subr.bf16.mxu1 %v1422_v3  ;;  %v1428_v7 = vld [vmem:[#allocation5 + $0x6c] ss:$48 sps:$4 sm:$0xff]   ;;  %v553_v1 = vlaneseq }
  0x5d   :  { %264 = vmatpush1.bf16.msra.mxu0 %v1421_v2  ;;  %307 = vmatpush1.bf16.msra.mxu1 %v1424_v4  ;;  %v1430_v8 = vld [vmem:[#allocation5 + $0x68] ss:$48 sps:$4 sm:$0xff]   ;;  %vm259_vm0 = vcmask 261120   ;;  %v1432_v10 = vld [vmem:[#allocation5 + $0x10] ss:$48 sps:$4 sm:$0xff]   ;;  %v1646_v32 = vmov 0.0  }
  0x5e   :  { %265 = vmatprep.subr.bf16.mxu0 %v1425_v5  ;;  %308 = vmatprep.subr.bf16.mxu1 %v1428_v7  ;;  %v1434_v11 = vld [vmem:[#allocation5 + $0x14] ss:$48 sps:$4 sm:$0xff]   ;;  %v1437_v12 = vld [vmem:[#allocation5 + $0x1c] ss:$48 sps:$4 sm:$0xff]   ;;  %v1435_v13 = vld [vmem:[#allocation5 + $0x18] ss:$48 sps:$4 sm:$0xff]  }
  0x5f   :  { %v1440_v14 = vld [vmem:[#allocation5 + $0x74] ss:$48 sps:$4 sm:$0xff]   ;;  %v1438_v15 = vld [vmem:[#allocation5 + $0x70] ss:$48 sps:$4 sm:$0xff]   ;;  %v1443_v16 = vld [vmem:[#allocation5 + $0x7c] ss:$48 sps:$4 sm:$0xff]  }
  0x60   :  { %v1446_v17 = vld [vmem:[#allocation5 + $0x24] ss:$48 sps:$4 sm:$0xff]   ;;  %v1441_v18 = vld [vmem:[#allocation5 + $0x78] ss:$48 sps:$4 sm:$0xff]   ;;  %v1449_v19 = vld [vmem:[#allocation5 + $0x2c] ss:$48 sps:$4 sm:$0xff]  }
  0x61   :  { %266 = vmatpush1.bf16.msra.mxu0 %v1427_v6  ;;  %309 = vmatpush1.bf16.msra.mxu1 %v1430_v8  ;;  %v1444_v20 = vld [vmem:[#allocation5 + $0x20] ss:$48 sps:$4 sm:$0xff]   ;;  %v1447_v21 = vld [vmem:[#allocation5 + $0x28] ss:$48 sps:$4 sm:$0xff]   ;;  %v1452_v22 = vld [vmem:[#allocation5 + $0x84] ss:$48 sps:$4 sm:$0xff]  }
  0x62   :  { %349 = vmatprep.subr.bf16.mxu0 %v1434_v11  ;;  %392 = vmatprep.subr.bf16.mxu1 %v1437_v12  ;;  %v1455_v23 = vld [vmem:[#allocation5 + $0x8c] ss:$48 sps:$4 sm:$0xff]   ;;  %v1450_v24 = vld [vmem:[#allocation5 + $0x80] ss:$48 sps:$4 sm:$0xff]   ;;  %v1453_v25 = vld [vmem:[#allocation5 + $0x88] ss:$48 sps:$4 sm:$0xff]  }
  0x63   :  { %v1456_v26 = vld [vmem:[#allocation7 + $0x40] sm:$0xff]   ;;  %v1458_v28 = vld [vmem:[#allocation7 + $0x48] sm:$0xff]   ;;  %v1460_v30 = vld [vmem:[#allocation7 + $0x50] sm:$0xff]   ;;  %vm1647_vm1 = vmmov 0   ;;  %vm538_vm2 = vcmask 1045504   ;;  %vm585_vm3 = vcmask 1044480  }
  0x64   :  { %1246 = vmatmul.mubr.msk.bf16.vlgmr.msra.gmra.mrb[0].mxu0 %vm259_vm0, %v1431_v9  ;;  %1247 = vmatmul.mubr.msk.bf16.vlgmr.msra.gmra.mrb[0].mxu1 %vm259_vm0, %v1431_v9  ;;  %v1457_v27 = vld [vmem:[#allocation7] sm:$0xff]   ;;  %v1459_v29 = vld [vmem:[#allocation7 + $0x8] sm:$0xff]   ;;  %v1461_v31 = vld [vmem:[#allocation7 + $0x10] sm:$0xff]   ;;  %vm640_vm4 = vcmask 1043456   ;;  %vm666_vm5 = vcmask 1041409   ;;  %s1648_s28 = smov [#allocation11]  }
  0x65   :  { %350 = vmatpush1.bf16.msra.mxu0 %v1432_v10  ;;  %381 = vmatprep.mubr.bf16.mxu0 %v1645_v0  ;;  %v1462_v33 = vld [vmem:[#allocation7 + $0x80] sm:$0xff]   ;;  %v1463_v34 = vld [vmem:[#allocation7 + $0x58] sm:$0xff]   ;;  %v1465_v36 = vld [vmem:[#allocation7 + $0x88] sm:$0xff]   ;;  %s1210_s29 = sshll.u32 %s1648_s28, 4  ;;  %s1211_s29 = int_to_ptr.vmem [resolvable:$true] %s1210_s29 }
  0x66   :  { %351 = vmatprep.subr.bf16.mxu0 %v1440_v14  ;;  %393 = vmatpush1.bf16.msra.mxu1 %v1435_v13  ;;  %v1464_v35 = vld [vmem:[#allocation7 + $0x18] sm:$0xff]   ;;  %v1466_v37 = vld [vmem:[#allocation7 + $0x60] sm:$0xff]   ;;  %v1468_v39 = vld [vmem:[#allocation7 + $0x90] sm:$0xff]   ;;  %p1611_p13 = scmp.lt.s32.totalorder %s1211_s29, %s1211_s29 }
  0x67   :  { %424 = vmatprep.mubr.bf16.mxu1 %v1645_v0  ;;  %394 = vmatprep.subr.bf16.mxu1 %v1443_v16  ;;  %v1467_v38 = vld [vmem:[#allocation7 + $0x20] sm:$0xff]   ;;  %v1469_v40 = vld [vmem:[#allocation7 + $0x68] sm:$0xff]   ;;  %v1471_v42 = vld [vmem:[#allocation7 + $0x98] sm:$0xff]  }
  0x68   :  { %v1470_v41 = vld [vmem:[#allocation7 + $0x28] sm:$0xff]   ;;  %v1472_v43 = vld [vmem:[#allocation7 + $0x70] sm:$0xff]   ;;  %v1474_v45 = vld [vmem:[#allocation7 + $0xa0] sm:$0xff]  }
  0x69   :  { %352 = vmatpush1.bf16.msra.mxu0 %v1438_v15  ;;  %v1473_v44 = vld [vmem:[#allocation7 + $0x30] sm:$0xff]   ;;  %v1475_v46 = vld [vmem:[#allocation7 + $0x78] sm:$0xff]   ;;  %v1477_v48 = vld [vmem:[#allocation7 + $0xa8] sm:$0xff]  }
  0x6a   :  { %435 = vmatprep.subr.bf16.mxu0 %v1446_v17  ;;  %395 = vmatpush1.bf16.msra.mxu1 %v1441_v18  ;;  %v1476_v47 = vld [vmem:[#allocation7 + $0x38] sm:$0xff]   ;;  %v1478_v49 = vld [vmem:[#allocation7 + $0xb0] sm:$0xff]  }
  0x6b   :  { %478 = vmatprep.subr.bf16.mxu1 %v1449_v19  ;;  %v1479_v50 = vld [vmem:[#allocation7 + $0xb8] sm:$0xff]  }
  0x6c   :  { %1248 = vmatmul.mubr.msk.bf16.vlgmr.msra.gmra.mrb[4].mxu0 %vm259_vm0, %v1431_v9 }
  0x6d   :  { %436 = vmatpush1.bf16.msra.mxu0 %v1444_v20  ;;  %467 = vmatprep.mubr.bf16.mxu0 %v1645_v0 }
  0x6e   :  { %1249 = vmatmul.mubr.msk.bf16.vlgmr.msra.gmra.mrb[4].mxu1 %vm259_vm0, %v1431_v9  ;;  %437 = vmatprep.subr.bf16.mxu0 %v1452_v22 }
  0x6f   :  { %479 = vmatpush1.bf16.msra.mxu1 %v1447_v21  ;;  %510 = vmatprep.mubr.bf16.mxu1 %v1645_v0 }
  0x70   :  { %480 = vmatprep.subr.bf16.mxu1 %v1455_v23 }
  0x71   :  { %438 = vmatpush1.bf16.msra.mxu0 %v1450_v24 }
  0x72   :  { %1297 = vmatprep.subr.bf16.mxu0 %v1456_v26 }
  0x73   :  { %481 = vmatpush1.bf16.msra.mxu1 %v1453_v25 }
  0x74   :  { %1250 = vmatmul.mubr.msk.bf16.vlgmr.msra.gmra.mrb[8].mxu0 %vm259_vm0, %v1431_v9  ;;  %1346 = vmatprep.subr.bf16.mxu1 %v1646_v32 }
  0x75   :  { %1298 = vmatpush3.bf16.msra.mxu0 %v1457_v27 }
  0x76   :  { %1251 = vmatmul.mubr.msk.bf16.vlgmr.msra.gmra.mrb[8].mxu1 %vm259_vm0, %v1431_v9  ;;  %1299 = vmatprep.subr.bf16.mxu0 %v1458_v28  ;;  %v1799_v9 = vshrl.u32 %v553_v1, 7 }
  0x77   :  { %1347 = vmatpush3.bf16.msra.mxu1 %v1462_v33  ;;  %1362 = vmatprep.mubr.msk.bf16.mxu1 %vm1647_vm1, %v1646_v32 }
  0x78   :  { %1348 = vmatprep.subr.bf16.mxu1 %v1646_v32  ;;  %v555_v28 = vsub.s32 0, %v1799_v9 }
  0x79   :  { %1300 = vmatpush3.bf16.msra.mxu0 %v1459_v29 }
  0x7a   :  { %1301 = vmatprep.subr.bf16.mxu0 %v1460_v30  ;;  %v1805_v30 = vld [vmem:[%s1864_s2] sm:$0x7] }
  0x7b   :  { %1349 = vmatpush3.bf16.msra.mxu1 %v1465_v36 }
  0x7c   :  { %1350 = vmatprep.subr.bf16.mxu1 %v1646_v32 }
  0x7d   :  { %1302 = vmatpush3.bf16.msra.mxu0 %v1461_v31 }
  0x7e   :  { %1303 = vmatprep.subr.bf16.mxu0 %v1463_v34 }
  0x7f   :  { %1351 = vmatpush3.bf16.msra.mxu1 %v1468_v39 }
  0x80   :  { %1352 = vmatprep.subr.bf16.mxu1 %v1646_v32 }
  0x81   :  { %1304 = vmatpush3.bf16.msra.mxu0 %v1464_v35 }
  0x82   :  { %1305 = vmatprep.subr.bf16.mxu0 %v1466_v37 }
  0x83   :  { %1353 = vmatpush3.bf16.msra.mxu1 %v1471_v42  ;;  %v556_v42 = vrot.slane %v1805_v30, %v555_v28 }
  0x84   :  { %1354 = vmatprep.subr.bf16.mxu1 %v1646_v32 }
  0x85   :  { %1306 = vmatpush3.bf16.msra.mxu0 %v1467_v38 }
  0x86   :  { %1307 = vmatprep.subr.bf16.mxu0 %v1469_v40 }
  0x87   :  { %1355 = vmatpush3.bf16.msra.mxu1 %v1474_v45 }
  0x88   :  { %1356 = vmatprep.subr.bf16.mxu1 %v1646_v32 }
  0x89   :  { %1308 = vmatpush3.bf16.msra.mxu0 %v1470_v41 }
  0x8a   :  { %1309 = vmatprep.subr.bf16.mxu0 %v1472_v43 }
  0x8b   :  { %1357 = vmatpush3.bf16.msra.mxu1 %v1477_v48 }
  0x8c   :  { %1358 = vmatprep.subr.bf16.mxu1 %v1646_v32 }
  0x8d   :  { %1310 = vmatpush3.bf16.msra.mxu0 %v1473_v44 }
  0x8e   :  { %1311 = vmatprep.subr.bf16.mxu0 %v1475_v46 }
  0x8f   :  { %1359 = vmatpush3.bf16.msra.mxu1 %v1478_v49 }
  0x90   :  { %1360 = vmatprep.subr.bf16.mxu1 %v1646_v32 }
  0x91   :  { %1312 = vmatpush3.bf16.msra.mxu0 %v1476_v47 }
  0x92   :  { %1366 = vmatprep.subr.bf16.mxu0 %v1646_v32 }
  0x93   :  { %1361 = vmatpush3.bf16.msra.mxu1 %v1479_v50 }
  0x94   :  { %1386 = vmatprep.subr.bf16.mxu1 %v1646_v32 }
 0x137   :  { %v297_v51 = vpop.f32.mrb[0].mxu0  ;;  %v340_v55 = vpop.f32.mrb[0].mxu1 }
 0x138   :  { %v299_v52 = vpop.f32.mrb[1].mxu0  ;;  %v532_v56 = vrot.slane %v340_v55, 2  ;;  %v342_v58 = vpop.f32.mrb[1].mxu1 }
 0x139   :  { %v524_v53 = vrot.slane %v299_v52, 1  ;;  %v301_v54 = vpop.f32.mrb[2].mxu0  ;;  %v344_v61 = vpop.f32.mrb[2].mxu1 }
 0x13a   :  { %v303_v57 = vpop.f32.mrb[3].mxu0  ;;  %v533_v62 = vrot.slane %v344_v61, 2  ;;  %v346_v63 = vpop.f32.mrb[3].mxu1 }
 0x13b   :  { %v528_v59 = vadd.f32 %v524_v53, %v297_v51  ;;  %v525_v60 = vrot.slane %v303_v57, 1 }
 0x13d   :  { %v536_v0 = vadd.f32 %v532_v56, %v528_v59  ;;  %v529_v2 = vadd.f32 %v525_v60, %v301_v54 }
 0x13f   :  { %v539_v3 = vsel %vm538_vm2, %v536_v0, -inf  ;;  %v537_v4 = vadd.f32 %v533_v62, %v529_v2  ;;  %v383_v5 = vpop.f32.mrb[4].mxu0  ;;  %v602_v2 = vsub.s32 1, %v1799_v9 }
 0x140   :  { %v540_v6 = vrot.slane %v539_v3, 4  ;;  %v563_v7 = vrot.slane %v383_v5, 1  ;;  %v385_v8 = vpop.f32.mrb[5].mxu0 }
 0x141   :  { %v546_v10 = vsel %vm538_vm2, %v537_v4, -inf  ;;  %v571_v11 = vrot.slane %v385_v8, 2  ;;  %v387_v12 = vpop.f32.mrb[6].mxu0  ;;  %v426_v13 = vpop.f32.mrb[4].mxu1 }
 0x142   :  { %v541_v14 = vmax.f32 %v539_v3, %v540_v6  ;;  %v547_v15 = vrot.slane %v546_v10, 4  ;;  %v567_v16 = vadd.f32 %v563_v7, %v342_v58  ;;  %v564_v17 = vrot.slane %v387_v12, 1  ;;  %v389_v18 = vpop.f32.mrb[7].mxu0  ;;  %v428_v19 = vpop.f32.mrb[5].mxu1 }
 0x143   :  { %v579_v20 = vrot.slane %v426_v13, 3  ;;  %v572_v21 = vrot.slane %v389_v18, 2  ;;  %v430_v22 = vpop.f32.mrb[6].mxu1 }
 0x144   :  { %v542_v23 = vrot.slane %v541_v14, 2  ;;  %v548_v24 = vmax.f32 %v546_v10, %v547_v15  ;;  %v575_v25 = vadd.f32 %v571_v11, %v567_v16  ;;  %v568_v26 = vadd.f32 %v564_v17, %v346_v63  ;;  %v432_v27 = vpop.f32.mrb[7].mxu1 }
 0x145   :  { %v580_v29 = vrot.slane %v430_v22, 3 }
 0x146   :  { %v543_v31 = vmax.f32 %v541_v14, %v542_v23  ;;  %v549_v33 = vrot.slane %v548_v24, 2  ;;  %v583_v34 = vadd.f32 %v579_v20, %v575_v25  ;;  %v576_v35 = vadd.f32 %v572_v21, %v568_v26 }
 0x147   :  { %v469_v36 = vpop.f32.mrb[8].mxu0 }
 0x148   :  { %v544_v37 = vrot.slane %v543_v31, 1  ;;  %v550_v38 = vmax.f32 %v548_v24, %v549_v33  ;;  %v586_v39 = vsel %vm585_vm3, %v583_v34, -inf  ;;  %v584_v40 = vadd.f32 %v580_v29, %v576_v35  ;;  %v471_v41 = vpop.f32.mrb[9].mxu0 }
 0x149   :  { %v587_v43 = vrot.slane %v586_v39, 4  ;;  %v610_v44 = vrot.slane %v469_v36, 1  ;;  %v618_v45 = vrot.slane %v471_v41, 2  ;;  %v473_v46 = vpop.f32.mrb[10].mxu0  ;;  %v512_v47 = vpop.f32.mrb[8].mxu1  ;;  %v603_v24 = vrot.slane %v1805_v30, %v602_v2  ;;  %v1489_v2 = vld [vmem:[#allocation10 + $0x8] sm:$0xff]  }
 0x14a   :  { %v545_v48 = vmax.f32 %v543_v31, %v544_v37  ;;  %v551_v49 = vrot.slane %v550_v38, 1  ;;  %v593_v50 = vsel %vm585_vm3, %v584_v40, -inf  ;;  %v611_v51 = vrot.slane %v473_v46, 1  ;;  %v475_v52 = vpop.f32.mrb[11].mxu0  ;;  %v514_v53 = vpop.f32.mrb[9].mxu1 }
 0x14b   :  { %v588_v54 = vmax.f32 %v586_v39, %v587_v43  ;;  %v594_v55 = vrot.slane %v593_v50, 4  ;;  %v614_v56 = vadd.f32 %v610_v44, %v428_v19  ;;  %v626_v57 = vrot.slane %v512_v47, 3  ;;  %v516_v58 = vpop.f32.mrb[10].mxu1 }
 0x14c   :  { %v552_v59 = vmax.f32 %v550_v38, %v551_v49  ;;  %v615_v60 = vadd.f32 %v611_v51, %v432_v27  ;;  %v619_v61 = vrot.slane %v475_v52, 2  ;;  %v518_v62 = vpop.f32.mrb[11].mxu1  ;;  %v557_v3 = vadd.f32 %v556_v42, %v545_v48 }
 0x14d   :  { %v589_v63 = vrot.slane %v588_v54, 2  ;;  %v595_v0 = vmax.f32 %v593_v50, %v594_v55  ;;  %v622_v1 = vadd.f32 %v618_v45, %v614_v56  ;;  %v627_v6 = vrot.slane %v516_v58, 3  ;;  %v1480_v50 = vld [vmem:[#allocation8] sm:$0xff]  }
 0x14e   :  { %v558_v4 = vadd.f32 %v556_v42, %v552_v59  ;;  %v623_v5 = vadd.f32 %v619_v61, %v615_v60  ;;  %v634_v11 = vrot.slane %v514_v53, 4  ;;  %v635_v14 = vrot.slane %v518_v62, 4  ;;  %v1483_v60 = vld [vmem:[#allocation8 + $0x18] sm:$0xff]   ;;  %v1484_v61 = vld [vmem:[#allocation8 + $0x20] sm:$0xff]   ;;  %v1485_v62 = vld [vmem:[#allocation8 + $0x28] sm:$0xff]  }
 0x14f   :  { %v590_v7 = vmax.f32 %v588_v54, %v589_v63  ;;  %v596_v8 = vrot.slane %v595_v0, 2  ;;  %v630_v10 = vadd.f32 %v626_v57, %v622_v1  ;;  %v559_v18 = vmax.f32 %v557_v3, 0.0  ;;  %v1481_v54 = vld [vmem:[#allocation8 + $0x8] sm:$0xff]   ;;  %v1482_v57 = vld [vmem:[#allocation8 + $0x10] sm:$0xff]   ;;  %v1488_v1 = vld [vmem:[#allocation10] sm:$0xff]  }
 0x150   :  { %v560_v12 = vmax.f32 %v558_v4, 0.0  ;;  %v631_v13 = vadd.f32 %v627_v6, %v623_v5  ;;  %v657_v37 = vsub.s32 2, %v1799_v9  ;;  %v1486_v63 = vld [vmem:[#allocation8 + $0x30] sm:$0xff]   ;;  %v1491_v4 = vld [vmem:[#allocation10 + $0x18] sm:$0xff]   ;;  %v1492_v5 = vld [vmem:[#allocation10 + $0x20] sm:$0xff]  }
 0x151   :  { %v591_v15 = vrot.slane %v590_v7, 1  ;;  %v597_v16 = vmax.f32 %v595_v0, %v596_v8  ;;  %v638_v17 = vadd.f32 %v634_v11, %v630_v10  ;;  %v1487_v0 = vld [vmem:[#allocation8 + $0x38] sm:$0xff]   ;;  %v1490_v3 = vld [vmem:[#allocation10 + $0x10] sm:$0xff]   ;;  %v1493_v6 = vld [vmem:[#allocation10 + $0x28] sm:$0xff]  }
 0x152   :  { %v639_v19 = vadd.f32 %v635_v14, %v631_v13  ;;  %v665_v20 = vrot.slane %v560_v12, 7  ;;  %v658_v45 = vrot.slane %v1805_v30, %v657_v37  ;;  %v1252_v13 = vld [vmem:[%s1866_s4] ss:$0 sm:$0xff] }
 0x153   :  { %v592_v21 = vmax.f32 %v590_v7, %v591_v15  ;;  %v598_v22 = vrot.slane %v597_v16, 1  ;;  %v641_v23 = vsel %vm640_vm4, %v638_v17, -inf }
 0x154   :  { %v642_v25 = vrot.slane %v641_v23, 4  ;;  %v648_v26 = vsel %vm640_vm4, %v639_v19, -inf  ;;  %v667_v27 = vsel %vm666_vm5, %v665_v20, %v559_v18  ;;  %v1277_v18 = vld [vmem:[%s1869_s7] ss:$0 sm:$0xff] }
 0x155   :  { %v599_v28 = vmax.f32 %v597_v16, %v598_v22  ;;  %v649_v29 = vrot.slane %v648_v26, 4  ;;  %v604_v34 = vadd.f32 %v603_v24, %v592_v21  ;;  %v679_v52 = vpack.c.bf16 %v667_v27, %v667_v27 }
 0x156   :  { %v643_v31 = vmax.f32 %v641_v23, %v642_v25  ;;  %v1495_v25 = vld [vmem:[#allocation10 + $0x38] sm:$0xff]  }
 0x157   :  { %v650_v33 = vmax.f32 %v648_v26, %v649_v29  ;;  %v605_v35 = vadd.f32 %v603_v24, %v599_v28  ;;  %v606_v42 = vmax.f32 %v604_v34, 0.0  ;;  %v1494_v24 = vld [vmem:[#allocation10 + $0x30] sm:$0xff]   ;;  %v1278_v26 = vld [vmem:[%s1868_s6] ss:$0 sm:$0xff]  ;;  %s1606_s6 = scalar_lea.vmem %s1211_s29, 32 }
 0x158   :  { %v644_v36 = vrot.slane %v643_v31, 2  ;;  %p1607_p12 = scmp.ne.s32.totalorder %s1211_s29, %s1606_s6  ;;  %p1612_p0 = scmp.lt.s32.totalorder %s1606_s6, %s1606_s6 }
 0x159   :  { %v651_v38 = vrot.slane %v650_v33, 2  ;;  %v607_v39 = vmax.f32 %v605_v35, 0.0 }
 0x15a   :  { %v645_v40 = vmax.f32 %v643_v31, %v644_v36  ;;  %v1287_v31 = vld [vmem:[%s1870_s8] ss:$0 sm:$0xff]  ;;  %p1613_p1 = por %p1612_p0, %p1611_p13 }
 0x15b   :  { %v652_v41 = vmax.f32 %v650_v33, %v651_v38  ;;  %v671_v43 = vrot.slane %v607_v39, 7 }
 0x15c   :  { %v646_v44 = vrot.slane %v645_v40, 1  ;;  %p1614_p2 = pnand %p1613_p1, %p1607_p12 }
 0x15d   :  { %v653_v46 = vrot.slane %v652_v41, 1  ;;  %v672_v47 = vsel %vm666_vm5, %v671_v43, %v606_v42 }
 0x15e   :  { %v647_v48 = vmax.f32 %v645_v40, %v646_v44  ;;  %v680_v49 = vpack.c.bf16 %v672_v47, %v672_v47 }
 0x15f   :  { %v654_v51 = vmax.f32 %v652_v41, %v653_v46 }
 0x160   :  { %913 = vmatprep.mubr.bf16.mxu0 %v680_v49  ;;  %v659_v53 = vadd.f32 %v658_v45, %v647_v48 }
 0x161   :  { %v660_v9 = vadd.f32 %v658_v45, %v654_v51  ;;  %914 = vmatmul.mubr.bf16.vlgmr.msra.gmra.mrb[12].mxu0 %v679_v52 }
 0x162   :  { %1367 = vmatpush3.bf16.msra.mxu0 %v1480_v50  ;;  %1382 = vmatprep.mubr.msk.bf16.mxu0 %vm1647_vm1, %v1646_v32  ;;  %v661_v30 = vmax.f32 %v659_v53, 0.0 }
 0x163   :  { %v662_v55 = vmax.f32 %v660_v9, 0.0  ;;  %1368 = vmatprep.subr.bf16.mxu0 %v1646_v32 }
 0x165   :  { %v676_v56 = vrot.slane %v662_v55, 7 }
 0x166   :  { %1369 = vmatpush3.bf16.msra.mxu0 %v1481_v54 }
 0x167   :  { %v677_v58 = vsel %vm666_vm5, %v676_v56, %v661_v30  ;;  %1370 = vmatprep.subr.bf16.mxu0 %v1646_v32 }
 0x168   :  { %v681_v59 = vpack.c.bf16 %v677_v58, %v677_v58 }
 0x16a   :  { %1363 = vmatmul.mubr.bf16.vlgmr.msra.gmra.mrb[12].mxu1 %v681_v59  ;;  %1371 = vmatpush3.bf16.msra.mxu0 %v1482_v57 }
 0x16b   :  { %1372 = vmatprep.subr.bf16.mxu0 %v1646_v32  ;;  %1402 = vmatprep.mubr.msk.bf16.mxu1 %vm1647_vm1, %v1646_v32 }
 0x16c   :  { %1387 = vmatpush3.bf16.msra.mxu1 %v1488_v1 }
 0x16d   :  { %1388 = vmatprep.subr.bf16.mxu1 %v1646_v32 }
 0x16e   :  { %1373 = vmatpush3.bf16.msra.mxu0 %v1483_v60 }
 0x16f   :  { %1374 = vmatprep.subr.bf16.mxu0 %v1646_v32 }
 0x170   :  { %1389 = vmatpush3.bf16.msra.mxu1 %v1489_v2 }
 0x171   :  { %1390 = vmatprep.subr.bf16.mxu1 %v1646_v32 }
 0x172   :  { %1375 = vmatpush3.bf16.msra.mxu0 %v1484_v61 }
 0x173   :  { %1376 = vmatprep.subr.bf16.mxu0 %v1646_v32 }
 0x174   :  { %1391 = vmatpush3.bf16.msra.mxu1 %v1490_v3 }
 0x175   :  { %1392 = vmatprep.subr.bf16.mxu1 %v1646_v32 }
 0x176   :  { %1377 = vmatpush3.bf16.msra.mxu0 %v1485_v62 }
 0x177   :  { %1378 = vmatprep.subr.bf16.mxu0 %v1646_v32 }
 0x178   :  { %1393 = vmatpush3.bf16.msra.mxu1 %v1491_v4 }
 0x179   :  { %1394 = vmatprep.subr.bf16.mxu1 %v1646_v32 }
 0x17a   :  { %1379 = vmatpush3.bf16.msra.mxu0 %v1486_v63 }
 0x17b   :  { %1380 = vmatprep.subr.bf16.mxu0 %v1646_v32 }
 0x17c   :  { %1395 = vmatpush3.bf16.msra.mxu1 %v1492_v5 }
 0x17d   :  { %1396 = vmatprep.subr.bf16.mxu1 %v1646_v32 }
 0x17e   :  { %1381 = vmatpush3.bf16.msra.mxu0 %v1487_v0 }
 0x180   :  { %1397 = vmatpush3.bf16.msra.mxu1 %v1493_v6 }
 0x181   :  { %1398 = vmatprep.subr.bf16.mxu1 %v1646_v32 }
 0x184   :  { %1399 = vmatpush3.bf16.msra.mxu1 %v1494_v24 }
 0x185   :  { %1400 = vmatprep.subr.bf16.mxu1 %v1646_v32  ;;  %v1288_v32 = vld [vmem:[%s1872_s10] ss:$0 sm:$0xff] }
 0x188   :  { %1401 = vmatpush3.bf16.msra.mxu1 %v1495_v25 }
 0x234   :  { %v1313_v7 = vpop.f32.mrb[12].mxu0 }
 0x235   :  { %v1314_v8 = vpop.f32.mrb[13].mxu0 }
 0x236   :  { %v1315_v10 = vadd.f32 %v1314_v8, %v1313_v7  ;;  %v1316_v11 = vpop.f32.mrb[14].mxu0 }
 0x237   :  { %v1317_v12 = vpop.f32.mrb[15].mxu0 }
 0x238   :  { %v916_v14 = vadd.f32 %v1315_v10, %v1252_v13 }
 0x23d   :  { %v955_v15 = vpop.f32.mrb[12].mxu1 }
 0x23e   :  { %v956_v16 = vadd.f32 %v955_v15, %v916_v14  ;;  %v1364_v17 = vpop.f32.mrb[13].mxu1 }
 0x23f   :  { %v958_v19 = vpop.f32.mrb[14].mxu1 }
 0x240   :  { %v961_v20 = vmax.f32 %v956_v16, 0.0  ;;  %v1365_v21 = vpop.f32.mrb[15].mxu1 }
 0x242   :  { %v969_v22 = vmul.f32 %v1277_v18, %v961_v20 }
 0x244   :  { %v970_v23 = vpack.c.bf16 %v969_v22, %v969_v22 }
 0x246   :  { %1383 = vmatmul.mubr.bf16.vlgmr.msra.gmra.mrb[16].mxu0 %v970_v23 }
 0x319   :  { %v1076_v27 = vpop.f32.mrb[16].mxu0 }
 0x31a   :  { %v1077_v28 = vadd.f32 %v1278_v26, %v1076_v27  ;;  %v1384_v29 = vpop.f32.mrb[17].mxu0 }
 0x31b   :  { %v1079_v33 = vpop.f32.mrb[18].mxu0 }
 0x31c   :  { %v1082_v34 = vmax.f32 %v1077_v28, 0.0  ;;  %v1385_v35 = vpop.f32.mrb[19].mxu0 }
 0x31e   :  { %v1090_v36 = vmul.f32 %v1287_v31, %v1082_v34 }
 0x320   :  { %v1091_v37 = vpack.c.bf16 %v1090_v36, %v1090_v36 }
 0x322   :  { %1403 = vmatmul.mubr.bf16.vlgmr.msra.gmra.mrb[16].mxu1 %v1091_v37 }
 0x3f5   :  { %v1197_v38 = vpop.f32.mrb[16].mxu1 }
 0x3f6   :  { %v1198_v39 = vadd.f32 %v1288_v32, %v1197_v38  ;;  %v1404_v40 = vpop.f32.mrb[17].mxu1 }
 0x3f7   :  { %v1200_v41 = vpop.f32.mrb[18].mxu1 }
 0x3f8   :  { %1203 = vst [vmem:[#allocation11] sm:$0x3] %v1198_v39  ;;  %v1405_v42 = vpop.f32.mrb[19].mxu1 }
 0x3f9   :  { %1617 = shalt.err (!%p1614_p2)
}
 0x3fa   :  { %s1618_s10 = scalar_lea.hbm %s1873_s11, 32 }
 0x3fb   :  { %p1619_p3 = scmp.ne.s32.totalorder %s1873_s11, %s1618_s10  ;;  %p1622_p4 = scmp.lt.u32.totalorder %s1618_s10, %s1873_s11 }
 0x3fd   :  { %p1624_p5 = pnand %p1622_p4, %p1619_p3 }
 0x3ff   :  { %1627 = shalt.err (!%p1624_p5)
}
 0x400   :  { %1213 = dma.vmem_to_hbm [thread:$0]  %s1211_s29, 32, %s1873_s11, [#allocation4]  }
 0x401   :  { %1634 = dma.done.wait [#allocation4], 32  }
 0x402   :  { %1635 = vsyncadd [#allocation4], 4294967264 }
 0x403   :  { %1217 = vsyncpa [#allocation3], 1 }
 0x404   :  { %1218 = vsyncpa [#allocation6], 1 }
 0x405   :  { %1219 = vsyncpa [#allocation9], 1 }
 0x406   :  { %1220 = vsyncpa [#allocation4], 1 }

</bundles_post_ra>
